<compile_context>
chip_gen: v7x
topology: tpu7x:2x2x1
jax: 0.10.0
libtpu: 0.0.40
codegen_flags: <defaults>
</compile_context>

<pallas_src>
import jax
import jax.numpy as jnp
from jax import lax
from jax.experimental import pallas as pl
from jax.experimental.pallas import tpu as pltpu

F32 = jnp.float32


# ---------------------------------------------------------------------------
# In-kernel math helpers
# ---------------------------------------------------------------------------

def _batched_loop_eval(feat, centers, w_all, b_all, n_loops, n_latent):
    """All n_loops regression evals as ONE MXU matmul.

    feat    : [1, max_n_feature]                flattened (ctx, loop, latent) window
    centers : [n_loops, max_n_feature]          tail-aligned, zero head
    w_all   : [max_n_feature, n_loops*n_latent] loop j -> cols j*nl:(j+1)*nl, zero head rows
    b_all   : [n_loops, n_latent]
    returns : [n_loops, n_latent]
    """
    x = jnp.tanh((feat - centers) * 0.5)                          # Loop.feat_process
    zfull = jnp.dot(x, w_all, preferred_element_type=F32)         # [L, L*nl]
    # pick the per-loop diagonal blocks without sublane concat: onehot row mask
    li = lax.broadcasted_iota(jnp.int32, (n_loops, 1), 0)
    z = jnp.zeros((n_loops, n_latent), F32)
    for j in range(n_loops):
        z = z + zfull[:, j * n_latent:(j + 1) * n_latent] * (li == j).astype(F32)
    z = z + b_all
    # Loop.target_process_inv with a single sqrt on |z| (no NaN dead branch)
    a = jnp.abs(z)
    sgn = jnp.where(z > 0.0, 1.0, -1.0)
    return jnp.where(a > 1.0, sgn * (2.0 * jnp.sqrt(a) - 1.0), z)


# ---------------------------------------------------------------------------
# Fused per-step kernel (encode + all loop evals + decode + fade)
# ---------------------------------------------------------------------------

def make_step_fn(n_loops, n_latent, max_n_context, n_memory, block_size,
                 latency_correct):
    max_n_feature = n_loops * max_n_context * n_latent

    def kernel(i_ref, m_ref, x_ref, feat_ref, c_ref, wl_ref, bl_ref,
               ew_ref, eb_ref, zprev_ref, dw_ref, db_ref, fade_ref,
               y_ref, zrow_ref, zenc_ref):
        # --- encode: synthetic pqmf + encoder linear map ------------------
        z_enc = jnp.dot(x_ref[...], ew_ref[...],
                        preferred_element_type=F32) + eb_ref[...]         # [1, nl]

        # --- all per-loop regressions in one matmul -----------------------
        z_evals = _batched_loop_eval(feat_ref[...], c_ref[...], wl_ref[...],
                                     bl_ref[...], n_loops, n_latent)      # [L, nl]

        # --- latents that end up in memory[record_index] (== decode input)
        li = lax.broadcasted_iota(jnp.int32, (n_loops, 1), 0)
        is_i = (li == i_ref[0]).astype(F32)                               # [L, 1]
        if latency_correct == 0:
            z_held = z_enc                                                # broadcasts [1,nl]
        else:
            z_held = zprev_ref[...]                                       # [L, nl]
        z_dec = is_i * z_held + (1.0 - is_i) * z_evals                    # [L, nl]

        # --- decode (synthetic decoder + pqmf.inverse) fused with fade mask
        y = jnp.dot(z_dec, dw_ref[...], preferred_element_type=F32) + db_ref[...]
        fade = fade_ref[...]                                              # [1, block]
        m0 = jnp.zeros((n_loops, 1), F32)
        m1 = jnp.zeros((n_loops, 1), F32)
        for j in range(n_loops):                                          # SMEM scalars
            sel = (li == j).astype(F32)
            m0 = m0 + sel * m_ref[j]
            m1 = m1 + sel * m_ref[n_loops + j]
        y_ref[...] = y * (m1 * fade + m0 * (1.0 - fade))                  # lane-dense store

        # latents for the host-side ring-memory writeback
        zrow_ref[...] = z_dec
        zenc_ref[...] = z_enc

    pcall = pl.pallas_call(
        kernel,
        out_shape=(jax.ShapeDtypeStruct((n_loops, block_size), F32),
                   jax.ShapeDtypeStruct((n_loops, n_latent), F32),
                   jax.ShapeDtypeStruct((1, n_latent), F32)),
        in_specs=([pl.BlockSpec(memory_space=pltpu.MemorySpace.SMEM)] * 2
                  + [pl.BlockSpec(memory_space=pltpu.MemorySpace.VMEM)] * 11),
        out_specs=(pl.BlockSpec(memory_space=pltpu.MemorySpace.VMEM),
                   pl.BlockSpec(memory_space=pltpu.MemorySpace.VMEM),
                   pl.BlockSpec(memory_space=pltpu.MemorySpace.VMEM)),
    )

    def step(i, rec_old, memory, mask, x, centers, w_all, b_all,
             enc_w, enc_b, dec_w, dec_b, fade):
        # feature window: last max_n_context frames ending at rec_old (pre-advance)
        idx = (rec_old - max_n_context + 1 + jnp.arange(max_n_context)) % n_memory
        feat = memory[idx].reshape(1, max_n_feature)
        rec = (rec_old + 1) % n_memory                       # advance()
        zprev = memory[rec]                                  # row before this step's writes

        i_arr = jnp.reshape(i, (1,)).astype(jnp.int32)
        m_arr = mask.reshape(2 * n_loops).astype(F32)
        y, z_row, z_enc = pcall(i_arr, m_arr, x, feat, centers, w_all, b_all,
                                enc_w, enc_b, zprev, dec_w, dec_b, fade)

        # ring-memory writeback (loop evals at rec; latency-corrected encode at rec-lc)
        memory = memory.at[rec].set(z_row)
        t_enc = (rec - latency_correct) % n_memory
        ic = jnp.maximum(i, 0)
        old = memory[t_enc, ic]
        memory = memory.at[t_enc, ic].set(jnp.where(i >= 0, z_enc[0], old))
        mask = mask.at[0].set(mask[1])                       # self.mask[0] = self.mask[1]
        return y[:, None, :], memory, mask

    return jax.jit(step)


def make_eval_fn(n_loops, n_latent, max_n_feature):
    """Batched loop eval only (rare fit-time latency-correction rollout)."""
    def kernel(feat_ref, c_ref, wl_ref, bl_ref, o_ref):
        o_ref[...] = _batched_loop_eval(feat_ref[...], c_ref[...], wl_ref[...],
                                        bl_ref[...], n_loops, n_latent)
    return jax.jit(pl.pallas_call(
        kernel,
        out_shape=jax.ShapeDtypeStruct((n_loops, n_latent), F32),
        in_specs=[pl.BlockSpec(memory_space=pltpu.MemorySpace.VMEM)] * 4,
        out_specs=pl.BlockSpec(memory_space=pltpu.MemorySpace.VMEM),
    ))


# ---------------------------------------------------------------------------
# Plain-JAX glue mirroring the torch modules (state, ring buffer, fitting)
# ---------------------------------------------------------------------------

class Loop:
    """Per-loop bookkeeping + rare fit path; hot eval runs batched in Pallas."""

    def __init__(self, index, n_loops, n_context, n_memory, n_fit, n_latent):
        self.index = index
        self.n_loops = n_loops
        self.max_n_context = n_context
        self.n_memory = n_memory
        self.n_fit = n_fit
        self.n_latent = n_latent
        self.max_n_feature = n_loops * n_context * n_latent
        self.reset()

    def reset(self):
        self.end_step = 0
        self.length = 0
        self.context = 0
        self.feature_size = 0

    def target_process(self, z):
        return jnp.where(z > 1, ((z + 1) / 2) ** 2,
                         jnp.where(z < -1, -((1 - z) / 2) ** 2, z))

    def fit(self, feature, z):
        # feature: [batch, context, loop, latent];  z: [batch, latent]
        self.context = feature.shape[1]
        assert feature.shape[2] == self.n_loops
        assert feature.shape[3] == self.n_latent
        feature = feature.reshape(feature.shape[0], -1)
        fs = feature.shape[1]
        self.feature_size = fs
        z = self.target_process(z)
        c = jnp.mean(feature, axis=0)
        feat = jnp.tanh((feature - c) * 0.5)
        b = jnp.mean(z, axis=0)
        # TODO(synk): torch.linalg.lstsq(driver='gelsd') has no clean Pallas
        # equivalent; the SVD-based least-squares solve stays in plain JAX.
        w, _, _, _ = jnp.linalg.lstsq(feat, z - b)
        return c, w, b


class LivingLooper:
    """JAX/Pallas port of the torch LivingLooper forward pass (fused hot path)."""

    def __init__(self, n_loops, n_context, n_memory, n_fit,
                 latency_correct, n_latent, block_size, key):
        self.n_loops = n_loops
        self.max_n_context = n_context
        self.n_memory = n_memory
        self.n_fit = n_fit
        self.min_loop = 2
        self.latency_correct = latency_correct
        self.block_size = block_size
        self.sampling_rate = 48000
        self.trained_cropped = False          # -> pad_size == 0 in decode
        self.n_latent = n_latent
        self.n_latent_decoder = n_latent
        self.max_n_feature = n_loops * n_context * n_latent
        self.loops = [Loop(i, n_loops, n_context, n_memory, n_fit, n_latent)
                      for i in range(n_loops)]

        # deterministic synthetic stand-ins for RAVE pqmf/encoder/decoder
        # TODO(synk): the real torch.jit ScriptModule encoder/decoder/pqmf are
        # external to this module; replaced here by fixed linear maps.
        k1, k2 = jax.random.split(key)
        self.enc_w = (0.05 * jax.random.normal(k1, (block_size, n_latent))).astype(F32)
        self.enc_b = jnp.zeros((1, n_latent), F32)
        self.dec_w = (0.05 * jax.random.normal(k2, (n_latent, block_size))).astype(F32)
        self.dec_b = jnp.zeros((1, block_size), F32)
        self.fade = jnp.linspace(0.0, 1.0, block_size, dtype=F32).reshape(1, block_size)

        # fused per-step kernel + rare-path eval kernel (compiled once each)
        self._step = make_step_fn(n_loops, n_latent, n_context, n_memory,
                                  block_size, latency_correct)
        self._eval = make_eval_fn(n_loops, n_latent, self.max_n_feature)

        self.reset()

    def reset(self):
        self.record_length = 0
        self.step = 0
        self.loop_index = -1
        self.record_index = 0
        for l in self.loops:
            l.reset()
        self.memory = jnp.zeros((self.n_memory, self.n_loops, self.n_latent), F32)
        self.mask = jnp.zeros((2, self.n_loops), F32)
        # tail-aligned packed regression parameters (static shapes -> no recompiles)
        self.centers_all = jnp.zeros((self.n_loops, self.max_n_feature), F32)
        self.w_all = jnp.zeros((self.max_n_feature, self.n_loops * self.n_latent), F32)
        self.b_all = jnp.zeros((self.n_loops, self.n_latent), F32)

    # ---- forward (one fused pallas_call inside one jitted step) ------------
    def forward(self, i, x, oneshot=0):
        self.step += 1
        if i > self.n_loops:
            i = 0
        i = i - 1
        i_prev = self.loop_index
        if i != i_prev:
            if i_prev >= 0 and self.record_length >= self.min_loop:
                self.fit_loop(i_prev, oneshot)
            if i >= 0:
                self.record_length = 0
                self.mask = self.mask.at[1, i].set(0.0)
            self.loop_index = i

        rec_old = self.record_index
        y, self.memory, self.mask = self._step(
            jnp.int32(i), jnp.int32(rec_old), self.memory, self.mask, x,
            self.centers_all, self.w_all, self.b_all,
            self.enc_w, self.enc_b, self.dec_w, self.dec_b, self.fade)
        self.record_index = (rec_old + 1) % self.n_memory   # mirror of advance()
        self.record_length += 1
        return y                                            # [loop, 1, sample]

    # ---- rare path: assemble dataset and fit a loop -------------------------
    def fit_loop(self, i, oneshot):
        ll = min(self.n_memory, self.record_length)
        ctx = min(self.max_n_context, ll // 2)
        lc = self.latency_correct
        if oneshot:
            mem = self.get_frames(ll, lc)
            train_mem = jnp.concatenate((mem[-ctx:], mem), 0)
        else:
            mem = self.get_frames(ll + ctx, lc)
            train_mem = mem
        train_mem = train_mem[-(self.n_fit + ctx):]
        # torch: train_mem.unfold(0, ctx, 1)[:-1].permute(0, 3, 1, 2)
        nwin = train_mem.shape[0] - ctx + 1
        idx = jnp.arange(nwin - 1)[:, None] + jnp.arange(ctx)[None, :]
        features = train_mem[idx]                           # [batch, ctx, loop, latent]
        targets = train_mem[ctx:, i, :]                     # [batch, latent]

        loop = self.loops[i]
        center, weights, bias = loop.fit(features, targets)
        # pack into the TAIL of the static buffers so the fused kernel keeps one
        # shape; the zero head rows contribute nothing to the matmul.
        fs = loop.feature_size
        off = self.max_n_feature - fs
        col = i * self.n_latent
        self.centers_all = self.centers_all.at[i, :].set(0.0)
        self.centers_all = self.centers_all.at[i, off:].set(center)
        self.w_all = self.w_all.at[:, col:col + self.n_latent].set(0.0)
        self.w_all = self.w_all.at[off:, col:col + self.n_latent].set(weights)
        self.b_all = self.b_all.at[i, :].set(bias)

        # latency-correction rollout: re-predict the last lc frames of loop i
        for dt in range(lc, 0, -1):
            mem2 = self.get_frames(self.max_n_context, dt)  # full-width static window
            feat2 = mem2.reshape(1, self.max_n_feature)
            z_all = self._eval(feat2, self.centers_all, self.w_all, self.b_all)
            self.record(z_all[i], i, dt - 1)
        self.mask = self.mask.at[1, i].set(1.0)

    # ---- ring-buffer helpers (host-side Python ints, eager) ----------------
    def record(self, z, i, dt):
        t = (self.record_index - dt) % self.n_memory
        self.memory = self.memory.at[t, i, :].set(z)

    def get_frames(self, n, skip=0):
        begin = self.record_index - n - skip + 1
        if begin < 0:
            begin1 = begin % self.n_memory
            block1 = self.memory[begin1:]
            begin2 = max(0, begin)
            block2 = self.memory[begin2:self.record_index + 1]
            r = jnp.concatenate((block1, block2))
        else:
            r = self.memory[begin:self.record_index + 1]
        if skip > 0:
            return r[:-skip]
        return r


# ---------------------------------------------------------------------------

if __name__ == "__main__":
    key = jax.random.PRNGKey(0)
    n_loops, n_context, n_memory, n_fit = 4, 4, 32, 16
    latency_correct, n_latent, block_size = 2, 8, 128

    looper = LivingLooper(n_loops, n_context, n_memory, n_fit,
                          latency_correct, n_latent, block_size, key)

    keys = jax.random.split(jax.random.PRNGKey(0), 8)
    y = None
    # record into loop 1 for several blocks
    for t in range(6):
        x = jax.random.normal(keys[t], (1, block_size), dtype=F32)
        y = looper.forward(1, x)
    # stop recording -> triggers fit of loop 1, then free-running continuation
    x = jax.random.normal(keys[6], (1, block_size), dtype=F32)
    y = looper.forward(0, x)
    x = jax.random.normal(keys[7], (1, block_size), dtype=F32)
    y = looper.forward(0, x)

    y = jax.block_until_ready(y)
    assert y.shape == (n_loops, 1, block_size), y.shape
    assert bool(jnp.all(jnp.isfinite(y)))
    print("KERNEL_OK")
</pallas_src>

<mosaic_0001>
module attributes {stable_mosaic.version = 11 : i64} {
  func.func @kernel(%arg0: memref<1xi32, #tpu.memory_space<smem>>, %arg1: memref<8xf32, #tpu.memory_space<smem>>, %arg2: memref<1x128xf32, #tpu.memory_space<vmem>>, %arg3: memref<1x128xf32, #tpu.memory_space<vmem>>, %arg4: memref<4x128xf32, #tpu.memory_space<vmem>>, %arg5: memref<128x32xf32, #tpu.memory_space<vmem>>, %arg6: memref<4x8xf32, #tpu.memory_space<vmem>>, %arg7: memref<128x8xf32, #tpu.memory_space<vmem>>, %arg8: memref<1x8xf32, #tpu.memory_space<vmem>>, %arg9: memref<4x8xf32, #tpu.memory_space<vmem>>, %arg10: memref<8x128xf32, #tpu.memory_space<vmem>>, %arg11: memref<1x128xf32, #tpu.memory_space<vmem>>, %arg12: memref<1x128xf32, #tpu.memory_space<vmem>>, %arg13: memref<4x128xf32, #tpu.memory_space<vmem>>, %arg14: memref<4x8xf32, #tpu.memory_space<vmem>>, %arg15: memref<1x8xf32, #tpu.memory_space<vmem>>) attributes {dimension_semantics = [], scalar_prefetch = 0 : i64, scratch_operands = 0 : i64, tpu.core_type = #tpu.core_type<tc>} {
    %c0 = arith.constant 0 : index
    %c0_0 = arith.constant 0 : index
    %0 = vector.load %arg2[%c0, %c0_0] : memref<1x128xf32, #tpu.memory_space<vmem>>, vector<1x128xf32>
    %c0_1 = arith.constant 0 : index
    %c0_2 = arith.constant 0 : index
    %1 = vector.load %arg7[%c0_1, %c0_2] : memref<128x8xf32, #tpu.memory_space<vmem>>, vector<128x8xf32>
    %cst = arith.constant dense<0.000000e+00> : vector<1x8xf32>
    %2 = tpu.matmul %0, %1, %cst {dimension_numbers = #tpu.dot_dimension_numbers<[1], [0], [0], [1], [0, 0, 1, 1], [], []>} : vector<1x128xf32>, vector<128x8xf32>, vector<1x8xf32> -> vector<1x8xf32>
    %c0_3 = arith.constant 0 : index
    %c0_4 = arith.constant 0 : index
    %3 = vector.load %arg8[%c0_3, %c0_4] : memref<1x8xf32, #tpu.memory_space<vmem>>, vector<1x8xf32>
    %4 = arith.addf %2, %3 : vector<1x8xf32>
    %c0_5 = arith.constant 0 : index
    %c0_6 = arith.constant 0 : index
    %5 = vector.load %arg3[%c0_5, %c0_6] : memref<1x128xf32, #tpu.memory_space<vmem>>, vector<1x128xf32>
    %c0_7 = arith.constant 0 : index
    %c0_8 = arith.constant 0 : index
    %6 = vector.load %arg4[%c0_7, %c0_8] : memref<4x128xf32, #tpu.memory_space<vmem>>, vector<4x128xf32>
    %c0_9 = arith.constant 0 : index
    %c0_10 = arith.constant 0 : index
    %7 = vector.load %arg5[%c0_9, %c0_10] : memref<128x32xf32, #tpu.memory_space<vmem>>, vector<128x32xf32>
    %c0_11 = arith.constant 0 : index
    %c0_12 = arith.constant 0 : index
    %8 = vector.load %arg6[%c0_11, %c0_12] : memref<4x8xf32, #tpu.memory_space<vmem>>, vector<4x8xf32>
    %9 = vector.broadcast %5 : vector<1x128xf32> to vector<4x128xf32>
    %10 = arith.subf %9, %6 : vector<4x128xf32>
    %cst_13 = arith.constant 5.000000e-01 : f32
    %11 = vector.broadcast %cst_13 : f32 to vector<4x128xf32>
    %12 = arith.mulf %10, %11 : vector<4x128xf32>
    %13 = math.tanh %12 : vector<4x128xf32>
    %cst_14 = arith.constant dense<0.000000e+00> : vector<4x32xf32>
    %14 = tpu.matmul %13, %7, %cst_14 {dimension_numbers = #tpu.dot_dimension_numbers<[1], [0], [0], [1], [0, 0, 1, 1], [], []>} : vector<4x128xf32>, vector<128x32xf32>, vector<4x32xf32> -> vector<4x32xf32>
    %15 = tpu.iota {dimensions = array<i32: 0>} : vector<4x1xi32>
    %cst_15 = arith.constant 0.000000e+00 : f32
    %16 = vector.broadcast %cst_15 : f32 to vector<4x8xf32>
    %17 = vector.extract_strided_slice %14 {offsets = [0, 0], sizes = [4, 8], strides = [1, 1]} : vector<4x32xf32> to vector<4x8xf32>
    %c0_i32 = arith.constant 0 : i32
    %18 = vector.broadcast %c0_i32 : i32 to vector<4x1xi32>
    %19 = arith.cmpi eq, %15, %18 : vector<4x1xi32>
    %20 = arith.extui %19 : vector<4x1xi1> to vector<4x1xi32>
    %21 = arith.sitofp %20 : vector<4x1xi32> to vector<4x1xf32>
    %22 = vector.broadcast %21 : vector<4x1xf32> to vector<4x8xf32>
    %23 = arith.mulf %17, %22 : vector<4x8xf32>
    %24 = arith.addf %16, %23 : vector<4x8xf32>
    %25 = vector.extract_strided_slice %14 {offsets = [0, 8], sizes = [4, 8], strides = [1, 1]} : vector<4x32xf32> to vector<4x8xf32>
    %c1_i32 = arith.constant 1 : i32
    %26 = vector.broadcast %c1_i32 : i32 to vector<4x1xi32>
    %27 = arith.cmpi eq, %15, %26 : vector<4x1xi32>
    %28 = arith.extui %27 : vector<4x1xi1> to vector<4x1xi32>
    %29 = arith.sitofp %28 : vector<4x1xi32> to vector<4x1xf32>
    %30 = vector.broadcast %29 : vector<4x1xf32> to vector<4x8xf32>
    %31 = arith.mulf %25, %30 : vector<4x8xf32>
    %32 = arith.addf %24, %31 : vector<4x8xf32>
    %33 = vector.extract_strided_slice %14 {offsets = [0, 16], sizes = [4, 8], strides = [1, 1]} : vector<4x32xf32> to vector<4x8xf32>
    %c2_i32 = arith.constant 2 : i32
    %34 = vector.broadcast %c2_i32 : i32 to vector<4x1xi32>
    %35 = arith.cmpi eq, %15, %34 : vector<4x1xi32>
    %36 = arith.extui %35 : vector<4x1xi1> to vector<4x1xi32>
    %37 = arith.sitofp %36 : vector<4x1xi32> to vector<4x1xf32>
    %38 = vector.broadcast %37 : vector<4x1xf32> to vector<4x8xf32>
    %39 = arith.mulf %33, %38 : vector<4x8xf32>
    %40 = arith.addf %32, %39 : vector<4x8xf32>
    %41 = vector.extract_strided_slice %14 {offsets = [0, 24], sizes = [4, 8], strides = [1, 1]} : vector<4x32xf32> to vector<4x8xf32>
    %c3_i32 = arith.constant 3 : i32
    %42 = vector.broadcast %c3_i32 : i32 to vector<4x1xi32>
    %43 = arith.cmpi eq, %15, %42 : vector<4x1xi32>
    %44 = arith.extui %43 : vector<4x1xi1> to vector<4x1xi32>
    %45 = arith.sitofp %44 : vector<4x1xi32> to vector<4x1xf32>
    %46 = vector.broadcast %45 : vector<4x1xf32> to vector<4x8xf32>
    %47 = arith.mulf %41, %46 : vector<4x8xf32>
    %48 = arith.addf %40, %47 : vector<4x8xf32>
    %49 = arith.addf %48, %8 : vector<4x8xf32>
    %50 = math.absf %49 : vector<4x8xf32>
    %cst_16 = arith.constant 0.000000e+00 : f32
    %51 = vector.broadcast %cst_16 : f32 to vector<4x8xf32>
    %52 = arith.cmpf ogt, %49, %51 : vector<4x8xf32>
    %cst_17 = arith.constant 1.000000e+00 : f32
    %cst_18 = arith.constant -1.000000e+00 : f32
    %53 = vector.broadcast %cst_17 : f32 to vector<4x8xf32>
    %54 = vector.broadcast %cst_18 : f32 to vector<4x8xf32>
    %55 = arith.select %52, %53, %54 : vector<4x8xi1>, vector<4x8xf32>
    %cst_19 = arith.constant 1.000000e+00 : f32
    %56 = vector.broadcast %cst_19 : f32 to vector<4x8xf32>
    %57 = arith.cmpf ogt, %50, %56 : vector<4x8xf32>
    %58 = math.sqrt %50 : vector<4x8xf32>
    %cst_20 = arith.constant 2.000000e+00 : f32
    %59 = vector.broadcast %cst_20 : f32 to vector<4x8xf32>
    %60 = arith.mulf %59, %58 : vector<4x8xf32>
    %cst_21 = arith.constant 1.000000e+00 : f32
    %61 = vector.broadcast %cst_21 : f32 to vector<4x8xf32>
    %62 = arith.subf %60, %61 : vector<4x8xf32>
    %63 = arith.mulf %55, %62 : vector<4x8xf32>
    %64 = arith.select %57, %63, %49 : vector<4x8xi1>, vector<4x8xf32>
    %65 = tpu.iota {dimensions = array<i32: 0>} : vector<4x1xi32>
    %c0_22 = arith.constant 0 : index
    %66 = memref.load %arg0[%c0_22] : memref<1xi32, #tpu.memory_space<smem>>
    %67 = vector.broadcast %66 : i32 to vector<4x1xi32>
    %68 = arith.cmpi eq, %65, %67 : vector<4x1xi32>
    %69 = arith.extui %68 : vector<4x1xi1> to vector<4x1xi32>
    %70 = arith.sitofp %69 : vector<4x1xi32> to vector<4x1xf32>
    %c0_23 = arith.constant 0 : index
    %c0_24 = arith.constant 0 : index
    %71 = vector.load %arg9[%c0_23, %c0_24] : memref<4x8xf32, #tpu.memory_space<vmem>>, vector<4x8xf32>
    %72 = vector.broadcast %70 : vector<4x1xf32> to vector<4x8xf32>
    %73 = arith.mulf %72, %71 : vector<4x8xf32>
    %cst_25 = arith.constant 1.000000e+00 : f32
    %74 = vector.broadcast %cst_25 : f32 to vector<4x1xf32>
    %75 = arith.subf %74, %70 : vector<4x1xf32>
    %76 = vector.broadcast %75 : vector<4x1xf32> to vector<4x8xf32>
    %77 = arith.mulf %76, %64 : vector<4x8xf32>
    %78 = arith.addf %73, %77 : vector<4x8xf32>
    %c0_26 = arith.constant 0 : index
    %c0_27 = arith.constant 0 : index
    %79 = vector.load %arg10[%c0_26, %c0_27] : memref<8x128xf32, #tpu.memory_space<vmem>>, vector<8x128xf32>
    %cst_28 = arith.constant dense<0.000000e+00> : vector<4x128xf32>
    %80 = tpu.matmul %78, %79, %cst_28 {dimension_numbers = #tpu.dot_dimension_numbers<[1], [0], [0], [1], [0, 0, 1, 1], [], []>} : vector<4x8xf32>, vector<8x128xf32>, vector<4x128xf32> -> vector<4x128xf32>
    %c0_29 = arith.constant 0 : index
    %c0_30 = arith.constant 0 : index
    %81 = vector.load %arg11[%c0_29, %c0_30] : memref<1x128xf32, #tpu.memory_space<vmem>>, vector<1x128xf32>
    %82 = vector.broadcast %81 : vector<1x128xf32> to vector<4x128xf32>
    %83 = arith.addf %80, %82 : vector<4x128xf32>
    %c0_31 = arith.constant 0 : index
    %c0_32 = arith.constant 0 : index
    %84 = vector.load %arg12[%c0_31, %c0_32] : memref<1x128xf32, #tpu.memory_space<vmem>>, vector<1x128xf32>
    %cst_33 = arith.constant 0.000000e+00 : f32
    %85 = vector.broadcast %cst_33 : f32 to vector<4x1xf32>
    %cst_34 = arith.constant 0.000000e+00 : f32
    %86 = vector.broadcast %cst_34 : f32 to vector<4x1xf32>
    %c0_i32_35 = arith.constant 0 : i32
    %87 = vector.broadcast %c0_i32_35 : i32 to vector<4x1xi32>
    %88 = arith.cmpi eq, %65, %87 : vector<4x1xi32>
    %89 = arith.extui %88 : vector<4x1xi1> to vector<4x1xi32>
    %90 = arith.sitofp %89 : vector<4x1xi32> to vector<4x1xf32>
    %c0_36 = arith.constant 0 : index
    %91 = memref.load %arg1[%c0_36] : memref<8xf32, #tpu.memory_space<smem>>
    %92 = vector.broadcast %91 : f32 to vector<4x1xf32>
    %93 = arith.mulf %90, %92 : vector<4x1xf32>
    %94 = arith.addf %85, %93 : vector<4x1xf32>
    %c4 = arith.constant 4 : index
    %95 = memref.load %arg1[%c4] : memref<8xf32, #tpu.memory_space<smem>>
    %96 = vector.broadcast %95 : f32 to vector<4x1xf32>
    %97 = arith.mulf %90, %96 : vector<4x1xf32>
    %98 = arith.addf %86, %97 : vector<4x1xf32>
    %c1_i32_37 = arith.constant 1 : i32
    %99 = vector.broadcast %c1_i32_37 : i32 to vector<4x1xi32>
    %100 = arith.cmpi eq, %65, %99 : vector<4x1xi32>
    %101 = arith.extui %100 : vector<4x1xi1> to vector<4x1xi32>
    %102 = arith.sitofp %101 : vector<4x1xi32> to vector<4x1xf32>
    %c1 = arith.constant 1 : index
    %103 = memref.load %arg1[%c1] : memref<8xf32, #tpu.memory_space<smem>>
    %104 = vector.broadcast %103 : f32 to vector<4x1xf32>
    %105 = arith.mulf %102, %104 : vector<4x1xf32>
    %106 = arith.addf %94, %105 : vector<4x1xf32>
    %c5 = arith.constant 5 : index
    %107 = memref.load %arg1[%c5] : memref<8xf32, #tpu.memory_space<smem>>
    %108 = vector.broadcast %107 : f32 to vector<4x1xf32>
    %109 = arith.mulf %102, %108 : vector<4x1xf32>
    %110 = arith.addf %98, %109 : vector<4x1xf32>
    %c2_i32_38 = arith.constant 2 : i32
    %111 = vector.broadcast %c2_i32_38 : i32 to vector<4x1xi32>
    %112 = arith.cmpi eq, %65, %111 : vector<4x1xi32>
    %113 = arith.extui %112 : vector<4x1xi1> to vector<4x1xi32>
    %114 = arith.sitofp %113 : vector<4x1xi32> to vector<4x1xf32>
    %c2 = arith.constant 2 : index
    %115 = memref.load %arg1[%c2] : memref<8xf32, #tpu.memory_space<smem>>
    %116 = vector.broadcast %115 : f32 to vector<4x1xf32>
    %117 = arith.mulf %114, %116 : vector<4x1xf32>
    %118 = arith.addf %106, %117 : vector<4x1xf32>
    %c6 = arith.constant 6 : index
    %119 = memref.load %arg1[%c6] : memref<8xf32, #tpu.memory_space<smem>>
    %120 = vector.broadcast %119 : f32 to vector<4x1xf32>
    %121 = arith.mulf %114, %120 : vector<4x1xf32>
    %122 = arith.addf %110, %121 : vector<4x1xf32>
    %c3_i32_39 = arith.constant 3 : i32
    %123 = vector.broadcast %c3_i32_39 : i32 to vector<4x1xi32>
    %124 = arith.cmpi eq, %65, %123 : vector<4x1xi32>
    %125 = arith.extui %124 : vector<4x1xi1> to vector<4x1xi32>
    %126 = arith.sitofp %125 : vector<4x1xi32> to vector<4x1xf32>
    %c3 = arith.constant 3 : index
    %127 = memref.load %arg1[%c3] : memref<8xf32, #tpu.memory_space<smem>>
    %128 = vector.broadcast %127 : f32 to vector<4x1xf32>
    %129 = arith.mulf %126, %128 : vector<4x1xf32>
    %130 = arith.addf %118, %129 : vector<4x1xf32>
    %c7 = arith.constant 7 : index
    %131 = memref.load %arg1[%c7] : memref<8xf32, #tpu.memory_space<smem>>
    %132 = vector.broadcast %131 : f32 to vector<4x1xf32>
    %133 = arith.mulf %126, %132 : vector<4x1xf32>
    %134 = arith.addf %122, %133 : vector<4x1xf32>
    %135 = vector.broadcast %134 : vector<4x1xf32> to vector<4x128xf32>
    %136 = vector.broadcast %84 : vector<1x128xf32> to vector<4x128xf32>
    %137 = arith.mulf %135, %136 : vector<4x128xf32>
    %cst_40 = arith.constant 1.000000e+00 : f32
    %138 = vector.broadcast %cst_40 : f32 to vector<1x128xf32>
    %139 = arith.subf %138, %84 : vector<1x128xf32>
    %140 = vector.broadcast %130 : vector<4x1xf32> to vector<4x128xf32>
    %141 = vector.broadcast %139 : vector<1x128xf32> to vector<4x128xf32>
    %142 = arith.mulf %140, %141 : vector<4x128xf32>
    %143 = arith.addf %137, %142 : vector<4x128xf32>
    %144 = arith.mulf %83, %143 : vector<4x128xf32>
    %c0_41 = arith.constant 0 : index
    %c0_42 = arith.constant 0 : index
    %145 = vector.load %arg13[%c0_41, %c0_42] : memref<4x128xf32, #tpu.memory_space<vmem>>, vector<4x128xf32>
    tpu.vector_store %arg13[%c0_41, %c0_42], %144 {strides = array<i32>} : memref<4x128xf32, #tpu.memory_space<vmem>>, vector<4x128xf32>,
    %c0_43 = arith.constant 0 : index
    %c0_44 = arith.constant 0 : index
    %146 = vector.load %arg14[%c0_43, %c0_44] : memref<4x8xf32, #tpu.memory_space<vmem>>, vector<4x8xf32>
    tpu.vector_store %arg14[%c0_43, %c0_44], %78 {strides = array<i32>} : memref<4x8xf32, #tpu.memory_space<vmem>>, vector<4x8xf32>,
    %c0_45 = arith.constant 0 : index
    %c0_46 = arith.constant 0 : index
    %147 = vector.load %arg15[%c0_45, %c0_46] : memref<1x8xf32, #tpu.memory_space<vmem>>, vector<1x8xf32>
    tpu.vector_store %arg15[%c0_45, %c0_46], %4 {strides = array<i32>} : memref<1x8xf32, #tpu.memory_space<vmem>>, vector<1x8xf32>,
    return
  }
}

</mosaic_0001>

<bundles_post_ra>
// kernel: step.1
= control target key start
LH: loop header
LB: loop body
LE: loop exit
PB: predicated region body
PF: predicated region fallthrough
CT: control target
= control target key end

     0   :  { %22 = vsyncpa [#allocation5], 0  ;;  %s981_s0 = inlined_call_operand.<no memory space> [shape: s32[1], index: 0, kind: input, shape index: {}]   ;;  %s982_s1 = inlined_call_operand.vmem [shape: f32[8], index: 1, kind: input, shape index: {}]   ;;  %s983_s2 = inlined_call_operand.vmem [shape: f32[1,128], index: 2, kind: input, shape index: {}]   ;;  %s984_s3 = inlined_call_operand.vmem [shape: f32[1,128], index: 3, kind: input, shape index: {}]   ;;  %s985_s4 = inlined_call_operand.vmem [shape: f32[4,128], index: 4, kind: input, shape index: {}]   ;;  %s986_s5 = inlined_call_operand.vmem [shape: f32[128,32], index: 5, kind: input, shape index: {}]   ;;  %s987_s6 = inlined_call_operand.vmem [shape: f32[4,8], index: 6, kind: input, shape index: {}]   ;;  %s988_s7 = inlined_call_operand.vmem [shape: f32[128,8], index: 7, kind: input, shape index: {}]   ;;  %s989_s8 = inlined_call_operand.vmem [shape: f32[1,8], index: 8, kind: input, shape index: {}]   ;;  %s990_s9 = inlined_call_operand.vmem [shape: f32[4,8], index: 9, kind: input, shape index: {}]   ;;  %s991_s10 = inlined_call_operand.vmem [shape: f32[8,128], index: 10, kind: input, shape index: {}]   ;;  %s992_s11 = inlined_call_operand.vmem [shape: f32[1,128], index: 11, kind: input, shape index: {}]   ;;  %s993_s12 = inlined_call_operand.vmem [shape: f32[1,128], index: 12, kind: input, shape index: {}]   ;;  %s994_s13 = inlined_call_operand.hbm [shape: f32[4,128], index: 13, kind: output, shape index: {0}]   ;;  %s995_s14 = inlined_call_operand.vmem [shape: f32[4,8], index: 14, kind: output, shape index: {1}]   ;;  %s996_s15 = inlined_call_operand.vmem [shape: f32[1,8], index: 15, kind: output, shape index: {2}]  }
   0x1   :  { %23 = vsyncpa [#allocation4], 0  ;;  %s32_s20 = sshll.u32 %s982_s1, 4  ;;  %s33_s20 = int_to_ptr.vmem [resolvable:$true] %s32_s20 }
   0x2   :  { %s656_s21 = scalar_lea.vmem %s33_s20, 16  ;;  %p661_p1 = scmp.lt.s32.totalorder %s33_s20, %s33_s20 }
   0x3   :  { %p657_p0 = scmp.ne.s32.totalorder %s33_s20, %s656_s21  ;;  %p662_p2 = scmp.lt.s32.totalorder %s656_s21, %s656_s21 }
   0x5   :  { %p663_p3 = por %p662_p2, %p661_p1 }
   0x7   :  { %p664_p4 = pnand %p663_p3, %p657_p0 }
   0x9   :  { %667 = shalt.err (!%p664_p4)
}
   0xa   :  { %s694_s22 = smov [#allocation3]  }
   0xb   :  { %35 = dma.vmem_to_smem %s33_s20, 16, %s694_s22, [#allocation5]  }
   0xc   :  { %690 = dma.done.wait [#allocation5], 16  }
   0xd   :  { %691 = vsyncadd [#allocation5], 4294967280 }
   0xe   :  { %61 = sfence }
   0xf   :  { %v152_v0 = vld [vmem:[%s986_s5] sm:$0xff]  ;;  %v153_v1 = vld [vmem:[%s986_s5 + $0x8] sm:$0xff]  ;;  %v154_v2 = vld [vmem:[%s986_s5 + $0x10] sm:$0xff]  ;;  %v695_v3 = vmov 0.0|0.0   ;;  %vm696_vm0 = vmmov 0   ;;  %v697_v6 = vmov 0.0   ;;  %v248_v31 = vlaneseq }
  0x10   :  { %619 = vmatprep.subr.bf16.mxu1 %v695_v3  ;;  %v620_v4 = vpack.c.bf16 %v153_v1, %v152_v0  ;;  %v155_v5 = vld [vmem:[%s986_s5 + $0x18] sm:$0xff]  ;;  %587 = vmatprep.mubr.msk.f32.mxu1 %vm696_vm0, %v697_v6  ;;  %v156_v8 = vld [vmem:[%s986_s5 + $0x20] sm:$0xff]  ;;  %v157_v9 = vld [vmem:[%s986_s5 + $0x28] sm:$0xff]  ;;  %s698_s22 = smov 104   ;;  %s699_s23 = smov 120   ;;  %vm316_vm10 = vcmask 64512  }
  0x11   :  { %595 = vmatprep.subr.bf16.mxu0 %v695_v3  ;;  %552 = vmatprep.mubr.msk.f32.mxu0 %vm696_vm0, %v697_v6  ;;  %v623_v7 = vpack.c.bf16 %v155_v5, %v154_v2  ;;  %v626_v10 = vpack.c.bf16 %v157_v9, %v156_v8  ;;  %v158_v11 = vld [vmem:[%s986_s5 + $0x30] sm:$0xff]  ;;  %v159_v12 = vld [vmem:[%s986_s5 + $0x38] sm:$0xff]  ;;  %v468_v13 = vld [vmem:[%s984_s3] ss:$0 sm:$0xff]  ;;  %v859_v35 = vshrl.u32 %v248_v31, 7  ;;  %s700_s27 = smov 112  }
  0x12   :  { %621 = vmatpush3.bf16.msra.mxu1 %v620_v4  ;;  %v151_v14 = vld [vmem:[%s985_s4] sm:$0xf]  ;;  %v629_v15 = vpack.c.bf16 %v159_v12, %v158_v11  ;;  %v161_v17 = vld [vmem:[%s986_s5 + $0x48] sm:$0xff]  ;;  %v162_v20 = vld [vmem:[%s986_s5 + $0x50] sm:$0xff]  ;;  %vm441_vm11 = vcmask 60416   ;;  %vm443_vm12 = vcmask 57344  }
  0x13   :  { %622 = vmatprep.subr.bf16.mxu1 %v695_v3  ;;  %v160_v16 = vld [vmem:[%s986_s5 + $0x40] sm:$0xff]  ;;  %v175_v18 = vsub.f32 %v468_v13, %v151_v14  ;;  %v163_v21 = vld [vmem:[%s986_s5 + $0x58] sm:$0xff]  ;;  %v165_v25 = vld [vmem:[%s986_s5 + $0x68] sm:$0xff]  ;;  %vm273_vm1 = vcmp.eq.s32.totalorder %v859_v35, 3  ;;  %vm255_vm2 = vcmp.eq.s32.totalorder %v859_v35, 1  ;;  %vm264_vm3 = vcmp.eq.s32.totalorder %v859_v35, 2 }
  0x14   :  { %v632_v19 = vpack.c.bf16 %v161_v17, %v160_v16  ;;  %v635_v23 = vpack.c.bf16 %v163_v21, %v162_v20  ;;  %v164_v24 = vld [vmem:[%s986_s5 + $0x60] sm:$0xff]  ;;  %v166_v27 = vld [vmem:[%s986_s5 + $0x70] sm:$0xff]  ;;  %v167_v28 = vld [vmem:[%s986_s5 + $0x78] sm:$0xff]  ;;  %v871_v39 = vsel %vm273_vm1, 1.0, %v697_v6  ;;  %v874_v40 = vsel %vm255_vm2, 1.0, %v697_v6  ;;  %s478_s3 = sld [smem:[#allocation3 + $0x1]] }
  0x15   :  { %v176_v22 = vmul.f32 0.5, %v175_v18  ;;  %v638_v26 = vpack.c.bf16 %v165_v25, %v164_v24  ;;  %v641_v29 = vpack.c.bf16 %v167_v28, %v166_v27  ;;  %v63_v32 = vld [vmem:[%s988_s7] sm:$0xff]  ;;  %v64_v33 = vld [vmem:[%s988_s7 + $0x8] sm:$0xff]  ;;  %v65_v36 = vld [vmem:[%s988_s7 + $0x10] sm:$0xff]  ;;  %v887_v48 = vsel %vm264_vm3, 1.0, %v697_v6  ;;  %s479_s30 = sld [smem:[#allocation3 + $0x5]] }
  0x16   :  { %624 = vmatpush3.bf16.msra.mxu1 %v623_v7  ;;  %v596_v34 = vpack.c.bf16 %v64_v33, %v63_v32  ;;  %v66_v37 = vld [vmem:[%s988_s7 + $0x18] sm:$0xff]  ;;  %v67_v41 = vld [vmem:[%s988_s7 + $0x20] sm:$0xff]  ;;  %v68_v42 = vld [vmem:[%s988_s7 + $0x28] sm:$0xff]  ;;  %vm250_vm4 = vcmp.eq.s32.totalorder %v859_v35, 0  ;;  %s391_s4 = sld [smem:[#allocation3]]  ;;  %s477_s16 = sld [smem:[#allocation3 + $0x4]] }
  0x17   :  { %625 = vmatprep.subr.bf16.mxu1 %v695_v3  ;;  %652 = vtanh.f32 %v176_v22  ;;  %v599_v38 = vpack.c.bf16 %v66_v37, %v65_v36  ;;  %v602_v43 = vpack.c.bf16 %v68_v42, %v67_v41  ;;  %v69_v49 = vld [vmem:[%s988_s7 + $0x30] sm:$0xff]  ;;  %v70_v50 = vld [vmem:[%s988_s7 + $0x38] sm:$0xff]  ;;  %v71_v53 = vld [vmem:[%s988_s7 + $0x40] sm:$0xff]  ;;  %s480_s17 = sld [smem:[#allocation3 + $0x2]]  ;;  %s481_s18 = sld [smem:[#allocation3 + $0x6]] }
  0x18   :  { %597 = vmatpush3.bf16.msra.mxu0 %v596_v34  ;;  %v605_v51 = vpack.c.bf16 %v70_v50, %v69_v49  ;;  %v72_v54 = vld [vmem:[%s988_s7 + $0x48] sm:$0xff]  ;;  %v73_v56 = vld [vmem:[%s988_s7 + $0x50] sm:$0xff]  ;;  %v74_v57 = vld [vmem:[%s988_s7 + $0x58] sm:$0xff]  ;;  %s482_s19 = sld [smem:[#allocation3 + $0x3]] }
  0x19   :  { %598 = vmatprep.subr.bf16.mxu0 %v695_v3  ;;  %v608_v55 = vpack.c.bf16 %v72_v54, %v71_v53  ;;  %v611_v58 = vpack.c.bf16 %v74_v57, %v73_v56  ;;  %v75_v59 = vld [vmem:[%s988_s7 + $0x60] sm:$0xff]  ;;  %v76_v60 = vld [vmem:[%s988_s7 + $0x68] sm:$0xff]  ;;  %v77_v62 = vld [vmem:[%s988_s7 + $0x70] sm:$0xff] }
  0x1a   :  { %627 = vmatpush3.bf16.msra.mxu1 %v626_v10  ;;  %v614_v61 = vpack.c.bf16 %v76_v60, %v75_v59  ;;  %v78_v63 = vld [vmem:[%s988_s7 + $0x78] sm:$0xff]  ;;  %v62_v1 = vld [vmem:[%s983_s2] sm:$0x1]  ;;  %v400_v37 = vstv %s478_s3  ;;  %v426_v60 = vsub.s32 0, %v859_v35 }
  0x1b   :  { %628 = vmatprep.subr.bf16.mxu1 %v695_v3  ;;  %v617_v0 = vpack.c.bf16 %v78_v63, %v77_v62  ;;  %v308_v2 = vld [vmem:[%s991_s10] sm:$0xff] }
  0x1c   :  { %600 = vmatpush3.bf16.msra.mxu0 %v599_v38  ;;  %v168_v11 = vld [vmem:[%s987_s6] sm:$0xf]  ;;  %v404_v38 = vstv %s479_s30  ;;  %v392_v41 = vstv %s391_s4  ;;  %v396_v42 = vstv %s477_s16 }
  0x1d   :  { %601 = vmatprep.subr.bf16.mxu0 %v695_v3  ;;  %v303_v24 = vld [vmem:[%s990_s9] sm:$0xf]  ;;  %v412_v49 = vstv %s481_s18 }
  0x1e   :  { %630 = vmatpush3.bf16.msra.mxu1 %v629_v15  ;;  %v299_v15 = vstv %s981_s0  ;;  %v416_v50 = vstv %s482_s19  ;;  %v413_v53 = vmul.f32 %v887_v48, %v412_v49  ;;  %v390_v56 = vld [vmem:[%s993_s12] sm:$0x1]  ;;  %s702_s12 = smov [#allocation6]  }
  0x1f   :  { %631 = vmatprep.subr.bf16.mxu1 %v695_v3  ;;  %vm300_vm5 = vcmp.eq.s32.totalorder %v859_v35, %v299_v15  ;;  %v417_v57 = vmul.f32 %v871_v39, %v416_v50 }
  0x20   :  { %603 = vmatpush3.bf16.msra.mxu0 %v602_v43  ;;  %v474_v21 = vsel %vm300_vm5, 1.0, %v697_v6  ;;  %v401_v43 = vmul.f32 %v874_v40, %v400_v37 }
  0x21   :  { %v653_v30 = vpop.eup %652  ;;  %604 = vmatprep.subr.bf16.mxu0 %v695_v3  ;;  %v305_v25 = vsub.f32 1.0, %v474_v21 }
  0x22   :  { %633 = vmatpush3.bf16.msra.mxu1 %v632_v19 }
  0x23   :  { %634 = vmatprep.subr.bf16.mxu1 %v695_v3 }
  0x24   :  { %606 = vmatpush3.bf16.msra.mxu0 %v605_v51 }
  0x25   :  { %607 = vmatprep.subr.bf16.mxu0 %v695_v3 }
  0x26   :  { %636 = vmatpush3.bf16.msra.mxu1 %v635_v23 }
  0x27   :  { %637 = vmatprep.subr.bf16.mxu1 %v695_v3 }
  0x28   :  { %609 = vmatpush3.bf16.msra.mxu0 %v608_v55 }
  0x29   :  { %610 = vmatprep.subr.bf16.mxu0 %v695_v3 }
  0x2a   :  { %639 = vmatpush3.bf16.msra.mxu1 %v638_v26  ;;  %v701_v26 = vmov -1.0  }
  0x2b   :  { %640 = vmatprep.subr.bf16.mxu1 %v695_v3 }
  0x2c   :  { %612 = vmatpush3.bf16.msra.mxu0 %v611_v58 }
  0x2d   :  { %613 = vmatprep.subr.bf16.mxu0 %v695_v3 }
  0x2e   :  { %642 = vmatpush3.bf16.msra.mxu1 %v641_v29  ;;  %v304_v29 = vmul.f32 %v474_v21, %v303_v24 }
  0x30   :  { %615 = vmatpush3.bf16.msra.mxu0 %v614_v61  ;;  %v430_v61 = vsub.f32 1.0, %v390_v56 }
  0x31   :  { %588 = vmatmul.mubr.f32.vlgmr.msra.gmra.mrb[0].mxu1 %v653_v30  ;;  %616 = vmatprep.subr.bf16.mxu0 %v695_v3  ;;  %v469_v3 = vsel %vm250_vm4, 1.0, %v697_v6 }
  0x34   :  { %618 = vmatpush3.bf16.msra.mxu0 %v617_v0  ;;  %v427_v0 = vrot.slane %v390_v56, %v426_v60 }
  0x35   :  { %590 = vmatprep.subr.mxu0 %v697_v6 }
  0x37   :  { %553 = vmatmul.mubr.f32.vlgmr.msra.gmra.mrb[0].mxu0 %v62_v1  ;;  %v435_v1 = vrot.slane %v430_v61, %v426_v60 }
  0x38   :  { %591 = vmatpush3.msra.mxu0 %v308_v2  ;;  %592 = vmatprep.mubr.msk.f32.mxu0 %vm696_vm0, %v697_v6  ;;  %v79_v6 = vld [vmem:[%s989_s8] sm:$0x1] }
 0x104   :  { %v244_v44 = vpop.f32.mrb[0].mxu1 }
 0x105   :  { %v589_v45 = vpop.f32.mrb[1].mxu1  ;;  %v276_v46 = vmul.f32 %v871_v39, %v244_v44  ;;  %v258_v47 = vmul.f32 %v874_v40, %v244_v44  ;;  %v267_v52 = vmul.f32 %v887_v48, %v244_v44  ;;  %v253_v5 = vmul.f32 %v469_v3, %v244_v44 }
 0x106   :  { %v405_v44 = vmul.f32 %v874_v40, %v404_v38  ;;  %v393_v45 = vmul.f32 %v469_v3, %v392_v41 }
 0x107   :  { %278 = vrot.lane.b32.xlu1 %v276_v46, %s698_s22  ;;  %260 = vrot.lane.b32.xlu0 %v258_v47, %s699_s23  ;;  %v397_v46 = vmul.f32 %v469_v3, %v396_v42  ;;  %v408_v47 = vstv %s480_s17  ;;  %v475_v3 = vld [vmem:[%s992_s11] ss:$0 sm:$0xff]  ;;  %s451_s22 = sshll.u32 %s702_s12, 4  ;;  %s452_s22 = int_to_ptr.vmem [resolvable:$true] %s451_s22 }
 0x108   :  { %v402_v54 = vadd.f32 %v401_v43, %v393_v45  ;;  %s668_s23 = scalar_lea.vmem %s452_s22, 64  ;;  %p673_p6 = scmp.lt.s32.totalorder %s452_s22, %s452_s22 }
 0x109   :  { %v406_v55 = vadd.f32 %v405_v44, %v397_v46  ;;  %p669_p5 = scmp.ne.s32.totalorder %s452_s22, %s668_s23  ;;  %p674_p7 = scmp.lt.s32.totalorder %s668_s23, %s668_s23 }
 0x10a   :  { %v146_v33 = vpop.f32.mrb[0].mxu0 }
 0x10b   :  { %269 = vrot.lane.b32.xlu0 %v267_v52, %s700_s27  ;;  %v147_v34 = vadd.f32 %v146_v33, %v79_v6  ;;  %v554_v36 = vpop.f32.mrb[1].mxu0  ;;  %v409_v52 = vmul.f32 %v887_v48, %v408_v47  ;;  %v414_v59 = vadd.f32 %v413_v53, %v406_v55  ;;  %p675_p8 = por %p674_p7, %p673_p6 }
 0x10d   :  { %444 = vst.msk [vmem:[%s996_s15] sm:$0x1] %vm443_vm12, %v147_v34  ;;  %v410_v58 = vadd.f32 %v409_v52, %v402_v54  ;;  %p676_p9 = pnand %p675_p8, %p669_p5 }
 0x10f   :  { %v418_v62 = vadd.f32 %v417_v57, %v410_v58 }
 0x111   :  { %v437_v2 = vmul.f32 %v435_v1, %v418_v62 }
 0x179   :  { %v261_v4 = vpop.permute.xlu0 %260  ;;  %v279_v10 = vpop.permute.xlu1 %278 }
 0x17a   :  { %v263_v7 = vadd.f32 %v261_v4, %v253_v5 }
 0x17d   :  { %v270_v8 = vpop.permute.xlu0 %269 }
 0x17e   :  { %v272_v9 = vadd.f32 %v270_v8, %v263_v7 }
 0x180   :  { %v281_v12 = vadd.f32 %v279_v10, %v272_v9 }
 0x182   :  { %v282_v13 = vadd.f32 %v281_v12, %v168_v11 }
 0x184   :  { %v283_v14 = vand.u32 2147483647, %v282_v13  ;;  %vm284_vm8 = vcmp.gt.f32.partialorder %v282_v13, 0.0 }
 0x185   :  { %v285_v27 = vsel %vm284_vm8, 1.0, %v701_v26 }
 0x186   :  { %654 = vrsqrt.f32 %v283_v14  ;;  %vm289_vm6 = vcmp.eq.f32.partialorder %v283_v14, inf  ;;  %v292_v18 = vand.u32 2147483648, %v283_v14  ;;  %vm291_vm7 = vcmp.eq.f32.partialorder %v283_v14, 0.0 }
 0x187   :  { %vm286_vm9 = vcmp.gt.f32.partialorder %v283_v14, 1.0 }
 0x190   :  { %v655_v16 = vpop.eup %654 }
 0x191   :  { %v288_v17 = vmul.f32 %v655_v16, %v283_v14 }
 0x193   :  { %v290_v19 = vsel %vm289_vm6, %v283_v14, %v288_v17 }
 0x194   :  { %v293_v20 = vsel %vm291_vm7, %v292_v18, %v290_v19 }
 0x195   :  { %v294_v22 = vmul.f32 2.0, %v293_v20 }
 0x197   :  { %v473_v23 = vadd.f32 -1.0, %v294_v22 }
 0x199   :  { %v296_v28 = vmul.f32 %v473_v23, %v285_v27 }
 0x19b   :  { %v297_v30 = vsel %vm286_vm9, %v296_v28, %v282_v13 }
 0x19c   :  { %v306_v31 = vmul.f32 %v305_v25, %v297_v30 }
 0x19e   :  { %v307_v32 = vadd.f32 %v306_v31, %v304_v29 }
 0x1a0   :  { %593 = vmatmul.mubr.msk.f32.vlgmr.msra.gmra.mrb[2].mxu0 %vm316_vm10, %v307_v32  ;;  %442 = vst.msk [vmem:[%s995_s14] sm:$0xf] %vm441_vm11, %v307_v32  ;;  %s483_s14 = sld [smem:[#allocation3 + $0x7]] }
 0x1a6   :  { %v420_v51 = vstv %s483_s14 }
 0x1a7   :  { %v421_v40 = vmul.f32 %v871_v39, %v420_v51 }
 0x1a9   :  { %v422_v63 = vadd.f32 %v421_v40, %v414_v59 }
 0x1ab   :  { %v429_v48 = vmul.f32 %v427_v0, %v422_v63 }
 0x1ad   :  { %v438_v4 = vadd.f32 %v437_v2, %v429_v48 }
 0x273   :  { %v386_v5 = vpop.f32.mrb[2].mxu0 }
 0x274   :  { %v387_v39 = vadd.f32 %v475_v3, %v386_v5  ;;  %v594_v7 = vpop.f32.mrb[3].mxu0 }
 0x276   :  { %v439_v8 = vmul.f32 %v438_v4, %v387_v39 }
 0x278   :  { %440 = vst [vmem:[#allocation6] sm:$0xf] %v439_v8 }
 0x279   :  { %679 = shalt.err (!%p676_p9)
}
 0x27a   :  { %s680_s11 = scalar_lea.hbm %s994_s13, 64 }
 0x27b   :  { %p681_p10 = scmp.ne.s32.totalorder %s994_s13, %s680_s11  ;;  %p684_p11 = scmp.lt.u32.totalorder %s680_s11, %s994_s13 }
 0x27d   :  { %p686_p12 = pnand %p684_p11, %p681_p10 }
 0x27f   :  { %689 = shalt.err (!%p686_p12)
}
 0x280   :  { %454 = dma.vmem_to_hbm [thread:$0]  %s452_s22, 64, %s994_s13, [#allocation4]  }
 0x281   :  { %692 = dma.done.wait [#allocation4], 64  }
 0x282   :  { %693 = vsyncadd [#allocation4], 4294967232 }
 0x283   :  { %466 = vsyncpa [#allocation4], 1 }
 0x284   :  { %467 = vsyncpa [#allocation5], 1 }

</bundles_post_ra>
